<compile_context>
chip_gen: v5e
topology: v5e:2x2
jax: 0.10.0
libtpu: 0.0.40
codegen_flags: <defaults>
</compile_context>

<pallas_src>
import jax
import jax.numpy as jnp
from jax import lax
from jax.experimental import pallas as pl
from jax.experimental.pallas import tpu as pltpu


def lstm_kernel(x_ref, wih_ref, whh_ref, b_ref,
                ys_ref, h_out_ref, c_out_ref,
                gx_sc):
    """Whole-sequence LSTM in one invocation; everything VMEM resident.

    x_ref:   (T*B, I)   flattened input
    wih_ref: (I, 4H)    pre-transposed, i/f/o columns pre-scaled by 0.5
    whh_ref: (H, 4H)    pre-transposed, i/f/o columns pre-scaled by 0.5
    b_ref:   (1, 4H)    b_ih + b_hh, i/f/o columns pre-scaled by 0.5
    ys_ref:  (T*B, H)   all hidden states (flattened)
    gx_sc:   (T*B, 4H)  hoisted input-projection scratch
    """
    TB, _ = x_ref.shape
    H = whh_ref.shape[0]
    B = h_out_ref.shape[0]
    T = TB // B

    # ---- Hoisted input projection (no sequential dependence, no reshape) ----
    # (T*B, I) @ (I, 4H) + bias  -> gates_x, stored flat in VMEM scratch.
    gx_sc[...] = (
        jnp.dot(x_ref[...], wih_ref[...], preferred_element_type=jnp.float32)
        + b_ref[...]
    )

    def step(t, carry):
        h_prev, c_prev = carry
        row = pl.multiple_of(t * B, B)

        # Serial work per step: one small matmul + elementwise.
        # W_hh stays a VMEM ref; loaded per step (cheap, bounds live range).
        z = gx_sc[pl.ds(row, B), :] + jnp.dot(
            h_prev, whh_ref[...], preferred_element_type=jnp.float32)

        # Single full-vreg EUP pass: i/f/o columns hold x/2 of the true
        # preactivation (pre-scaled weights), so sigmoid = 0.5*(1+tanh).
        th = jnp.tanh(z)                       # one EUP pass over (B, 4H)
        i_g = 0.5 * (1.0 + th[:, 0 * H:1 * H])
        f_g = 0.5 * (1.0 + th[:, 1 * H:2 * H])
        g_g = th[:, 2 * H:3 * H]
        o_g = 0.5 * (1.0 + th[:, 3 * H:4 * H])

        c_new = f_g * c_prev + i_g * g_g
        h_new = o_g * jnp.tanh(c_new)

        ys_ref[pl.ds(row, B), :] = h_new       # VMEM store; HBM writeback once
        return h_new, c_new

    h0 = jnp.zeros((B, H), jnp.float32)
    c0 = jnp.zeros((B, H), jnp.float32)
    # Cap the unroll to bound vreg live ranges / compile time at larger T.
    h_n, c_n = lax.fori_loop(0, T, step, (h0, c0), unroll=min(T, 8))

    # Final states written exactly once.
    h_out_ref[...] = h_n
    c_out_ref[...] = c_n


def lstm_forward(x, w_ih, w_hh, b_ih, b_hh):
    """x: (T, B, I) f32.  Returns (output (T,B,H), (h_n (1,B,H), c_n (1,B,H)))."""
    T, B, I = x.shape
    H4, _ = w_ih.shape
    H = H4 // 4

    # Pre-transpose weights so in-kernel matmuls are plain row-major x @ W,
    # and pre-scale the i/f/o gate columns by 0.5 so one tanh pass recovers
    # all gates in-kernel: sigmoid(x) = 0.5 * (1 + tanh(x/2)).
    col_scale = jnp.concatenate([
        jnp.full((2 * H,), 0.5, jnp.float32),   # i, f
        jnp.ones((H,), jnp.float32),            # g (true tanh gate)
        jnp.full((H,), 0.5, jnp.float32),       # o
    ])                                          # (4H,)

    wih_t = jnp.asarray(w_ih.T, jnp.float32) * col_scale[None, :]   # (I, 4H)
    whh_t = jnp.asarray(w_hh.T, jnp.float32) * col_scale[None, :]   # (H, 4H)
    bias = (jnp.asarray(b_ih + b_hh, jnp.float32) * col_scale)[None, :]  # (1, 4H)

    x_flat = x.reshape(T * B, I).astype(jnp.float32)                # (T*B, I)

    ys_flat, h_n, c_n = pl.pallas_call(
        lstm_kernel,
        out_shape=(
            jax.ShapeDtypeStruct((T * B, H), jnp.float32),
            jax.ShapeDtypeStruct((B, H), jnp.float32),
            jax.ShapeDtypeStruct((B, H), jnp.float32),
        ),
        grid_spec=pltpu.PrefetchScalarGridSpec(
            num_scalar_prefetch=0,
            grid=(1,),                                        # single invocation
            in_specs=[
                pl.BlockSpec((T * B, I), lambda i: (0, 0)),       # x (flat, resident)
                pl.BlockSpec((I, 4 * H), lambda i: (0, 0)),       # W_ih^T (scaled)
                pl.BlockSpec((H, 4 * H), lambda i: (0, 0)),       # W_hh^T (scaled)
                pl.BlockSpec((1, 4 * H), lambda i: (0, 0)),       # bias   (scaled)
            ],
            out_specs=[
                pl.BlockSpec((T * B, H), lambda i: (0, 0)),       # all hidden states
                pl.BlockSpec((B, H), lambda i: (0, 0)),           # h_n
                pl.BlockSpec((B, H), lambda i: (0, 0)),           # c_n
            ],
            scratch_shapes=[
                pltpu.VMEM((T * B, 4 * H), jnp.float32),          # hoisted x-gates
            ],
        ),
        compiler_params=pltpu.CompilerParams(
            dimension_semantics=("arbitrary",),
        ),
    )(x_flat, wih_t, whh_t, bias)

    ys = ys_flat.reshape(T, B, H)
    return ys, (h_n[None], c_n[None])


def lstm_reference(x, w_ih, w_hh, b_ih, b_hh):
    """Pure-JAX reference matching torch.nn.LSTM semantics (1 layer, no h0/c0)."""
    T, B, I = x.shape
    H = w_hh.shape[1]

    def step(carry, x_t):
        h, c = carry
        z = x_t @ w_ih.T + h @ w_hh.T + b_ih + b_hh
        i = jax.nn.sigmoid(z[:, 0 * H:1 * H])
        f = jax.nn.sigmoid(z[:, 1 * H:2 * H])
        g = jnp.tanh(z[:, 2 * H:3 * H])
        o = jax.nn.sigmoid(z[:, 3 * H:4 * H])
        c = f * c + i * g
        h = o * jnp.tanh(c)
        return (h, c), h

    (h_n, c_n), ys = jax.lax.scan(step, (jnp.zeros((B, H)), jnp.zeros((B, H))), x)
    return ys, (h_n[None], c_n[None])


if __name__ == "__main__":
    # Small shapes implied by an nn.LSTM-style forward: seq=8, batch=2,
    # input_size=32, hidden_size=32.
    T, B, I, H = 8, 2, 32, 32
    key = jax.random.PRNGKey(0)
    kx, k1, k2, k3, k4 = jax.random.split(key, 5)

    bound = 1.0 / jnp.sqrt(H)
    x = jax.random.normal(kx, (T, B, I), jnp.float32)
    w_ih = jax.random.uniform(k1, (4 * H, I), jnp.float32, -bound, bound)
    w_hh = jax.random.uniform(k2, (4 * H, H), jnp.float32, -bound, bound)
    b_ih = jax.random.uniform(k3, (4 * H,), jnp.float32, -bound, bound)
    b_hh = jax.random.uniform(k4, (4 * H,), jnp.float32, -bound, bound)

    ys, (h_n, c_n) = lstm_forward(x, w_ih, w_hh, b_ih, b_hh)
    jax.block_until_ready((ys, h_n, c_n))

    ys_ref, (h_ref, c_ref) = lstm_reference(x, w_ih, w_hh, b_ih, b_hh)
    # Slightly looser tolerance: sigmoid is computed via the tanh identity.
    assert jnp.allclose(ys, ys_ref, atol=2e-5, rtol=1e-4)
    assert jnp.allclose(h_n, h_ref, atol=2e-5, rtol=1e-4)
    assert jnp.allclose(c_n, c_ref, atol=2e-5, rtol=1e-4)

    # TODO(synk): the original module's forward() is `pass` and nn.LSTM() has no
    # configured sizes; we implement the implied 1-layer LSTM inference path.
    print("KERNEL_OK")
</pallas_src>

<mosaic_0001>
module attributes {stable_mosaic.version = 11 : i64} {
  func.func @lstm_kernel(%arg0: i32, %arg1: memref<16x32xf32, #tpu.memory_space<vmem>>, %arg2: memref<32x128xf32, #tpu.memory_space<vmem>>, %arg3: memref<32x128xf32, #tpu.memory_space<vmem>>, %arg4: memref<1x128xf32, #tpu.memory_space<vmem>>, %arg5: memref<16x32xf32, #tpu.memory_space<vmem>>, %arg6: memref<2x32xf32, #tpu.memory_space<vmem>>, %arg7: memref<2x32xf32, #tpu.memory_space<vmem>>, %arg8: memref<16x128xf32, #tpu.memory_space<vmem>>) attributes {dimension_semantics = [#tpu.dimension_semantics<arbitrary>], iteration_bounds = array<i64: 1>, scalar_prefetch = 0 : i64, scratch_operands = 1 : i64, tpu.core_type = #tpu.core_type<tc>, window_params = [{pipeline_mode = #tpu.pipeline_mode<synchronous>, transform_indices = @transform_0, window_bounds = array<i64: 16, 32>}, {pipeline_mode = #tpu.pipeline_mode<synchronous>, transform_indices = @transform_1, window_bounds = array<i64: 32, 128>}, {pipeline_mode = #tpu.pipeline_mode<synchronous>, transform_indices = @transform_2, window_bounds = array<i64: 32, 128>}, {pipeline_mode = #tpu.pipeline_mode<synchronous>, transform_indices = @transform_3, window_bounds = array<i64: 1, 128>}, {pipeline_mode = #tpu.pipeline_mode<synchronous>, transform_indices = @transform_4, window_bounds = array<i64: 16, 32>}, {pipeline_mode = #tpu.pipeline_mode<synchronous>, transform_indices = @transform_5, window_bounds = array<i64: 2, 32>}, {pipeline_mode = #tpu.pipeline_mode<synchronous>, transform_indices = @transform_6, window_bounds = array<i64: 2, 32>}]} {
    %c0 = arith.constant 0 : index
    %c0_0 = arith.constant 0 : index
    %0 = vector.load %arg1[%c0, %c0_0] : memref<16x32xf32, #tpu.memory_space<vmem>>, vector<16x32xf32>
    %c0_1 = arith.constant 0 : index
    %c0_2 = arith.constant 0 : index
    %1 = vector.load %arg2[%c0_1, %c0_2] : memref<32x128xf32, #tpu.memory_space<vmem>>, vector<32x128xf32>
    %cst = arith.constant dense<0.000000e+00> : vector<16x128xf32>
    %2 = tpu.matmul %0, %1, %cst {dimension_numbers = #tpu.dot_dimension_numbers<[1], [0], [0], [1], [0, 0, 1, 1], [], []>} : vector<16x32xf32>, vector<32x128xf32>, vector<16x128xf32> -> vector<16x128xf32>
    %c0_3 = arith.constant 0 : index
    %c0_4 = arith.constant 0 : index
    %3 = vector.load %arg4[%c0_3, %c0_4] : memref<1x128xf32, #tpu.memory_space<vmem>>, vector<1x128xf32>
    %4 = vector.broadcast %3 : vector<1x128xf32> to vector<16x128xf32>
    %5 = arith.addf %2, %4 : vector<16x128xf32>
    %c0_5 = arith.constant 0 : index
    %c0_6 = arith.constant 0 : index
    %6 = vector.load %arg8[%c0_5, %c0_6] : memref<16x128xf32, #tpu.memory_space<vmem>>, vector<16x128xf32>
    tpu.vector_store %arg8[%c0_5, %c0_6], %5 {strides = array<i32>} : memref<16x128xf32, #tpu.memory_space<vmem>>, vector<16x128xf32>,
    %cst_7 = arith.constant 0.000000e+00 : f32
    %7 = vector.broadcast %cst_7 : f32 to vector<2x32xf32>
    %cst_8 = arith.constant 0.000000e+00 : f32
    %8 = vector.broadcast %cst_8 : f32 to vector<2x32xf32>
    %c0_i32 = arith.constant 0 : i32
    %c2_i32 = arith.constant 2 : i32
    %9 = arith.muli %c0_i32, %c2_i32 : i32
    %10 = tpu.assume_multiple %9, 2 : i32
    %11 = arith.index_cast %10 : i32 to index
    %c0_9 = arith.constant 0 : index
    %12 = vector.load %arg8[%11, %c0_9] : memref<16x128xf32, #tpu.memory_space<vmem>>, vector<2x128xf32>
    %c0_10 = arith.constant 0 : index
    %c0_11 = arith.constant 0 : index
    %13 = vector.load %arg3[%c0_10, %c0_11] : memref<32x128xf32, #tpu.memory_space<vmem>>, vector<32x128xf32>
    %cst_12 = arith.constant dense<0.000000e+00> : vector<2x128xf32>
    %14 = tpu.matmul %7, %13, %cst_12 {dimension_numbers = #tpu.dot_dimension_numbers<[1], [0], [0], [1], [0, 0, 1, 1], [], []>} : vector<2x32xf32>, vector<32x128xf32>, vector<2x128xf32> -> vector<2x128xf32>
    %15 = arith.addf %12, %14 : vector<2x128xf32>
    %16 = math.tanh %15 : vector<2x128xf32>
    %17 = vector.extract_strided_slice %16 {offsets = [0, 0], sizes = [2, 32], strides = [1, 1]} : vector<2x128xf32> to vector<2x32xf32>
    %cst_13 = arith.constant 1.000000e+00 : f32
    %18 = vector.broadcast %cst_13 : f32 to vector<2x32xf32>
    %19 = arith.addf %18, %17 : vector<2x32xf32>
    %cst_14 = arith.constant 5.000000e-01 : f32
    %20 = vector.broadcast %cst_14 : f32 to vector<2x32xf32>
    %21 = arith.mulf %20, %19 : vector<2x32xf32>
    %22 = vector.extract_strided_slice %16 {offsets = [0, 32], sizes = [2, 32], strides = [1, 1]} : vector<2x128xf32> to vector<2x32xf32>
    %cst_15 = arith.constant 1.000000e+00 : f32
    %23 = vector.broadcast %cst_15 : f32 to vector<2x32xf32>
    %24 = arith.addf %23, %22 : vector<2x32xf32>
    %cst_16 = arith.constant 5.000000e-01 : f32
    %25 = vector.broadcast %cst_16 : f32 to vector<2x32xf32>
    %26 = arith.mulf %25, %24 : vector<2x32xf32>
    %27 = vector.extract_strided_slice %16 {offsets = [0, 64], sizes = [2, 32], strides = [1, 1]} : vector<2x128xf32> to vector<2x32xf32>
    %28 = vector.extract_strided_slice %16 {offsets = [0, 96], sizes = [2, 32], strides = [1, 1]} : vector<2x128xf32> to vector<2x32xf32>
    %cst_17 = arith.constant 1.000000e+00 : f32
    %29 = vector.broadcast %cst_17 : f32 to vector<2x32xf32>
    %30 = arith.addf %29, %28 : vector<2x32xf32>
    %cst_18 = arith.constant 5.000000e-01 : f32
    %31 = vector.broadcast %cst_18 : f32 to vector<2x32xf32>
    %32 = arith.mulf %31, %30 : vector<2x32xf32>
    %33 = arith.mulf %26, %8 : vector<2x32xf32>
    %34 = arith.mulf %21, %27 : vector<2x32xf32>
    %35 = arith.addf %33, %34 : vector<2x32xf32>
    %36 = math.tanh %35 : vector<2x32xf32>
    %37 = arith.mulf %32, %36 : vector<2x32xf32>
    %38 = arith.index_cast %10 : i32 to index
    %c0_19 = arith.constant 0 : index
    %39 = vector.load %arg5[%38, %c0_19] : memref<16x32xf32, #tpu.memory_space<vmem>>, vector<2x32xf32>
    tpu.vector_store %arg5[%38, %c0_19], %37 {strides = array<i32>} : memref<16x32xf32, #tpu.memory_space<vmem>>, vector<2x32xf32>,
    %c1_i32 = arith.constant 1 : i32
    %c2_i32_20 = arith.constant 2 : i32
    %40 = arith.muli %c1_i32, %c2_i32_20 : i32
    %41 = tpu.assume_multiple %40, 2 : i32
    %42 = arith.index_cast %41 : i32 to index
    %c0_21 = arith.constant 0 : index
    %43 = vector.load %arg8[%42, %c0_21] : memref<16x128xf32, #tpu.memory_space<vmem>>, vector<2x128xf32>
    %c0_22 = arith.constant 0 : index
    %c0_23 = arith.constant 0 : index
    %44 = vector.load %arg3[%c0_22, %c0_23] : memref<32x128xf32, #tpu.memory_space<vmem>>, vector<32x128xf32>
    %cst_24 = arith.constant dense<0.000000e+00> : vector<2x128xf32>
    %45 = tpu.matmul %37, %44, %cst_24 {dimension_numbers = #tpu.dot_dimension_numbers<[1], [0], [0], [1], [0, 0, 1, 1], [], []>} : vector<2x32xf32>, vector<32x128xf32>, vector<2x128xf32> -> vector<2x128xf32>
    %46 = arith.addf %43, %45 : vector<2x128xf32>
    %47 = math.tanh %46 : vector<2x128xf32>
    %48 = vector.extract_strided_slice %47 {offsets = [0, 0], sizes = [2, 32], strides = [1, 1]} : vector<2x128xf32> to vector<2x32xf32>
    %cst_25 = arith.constant 1.000000e+00 : f32
    %49 = vector.broadcast %cst_25 : f32 to vector<2x32xf32>
    %50 = arith.addf %49, %48 : vector<2x32xf32>
    %cst_26 = arith.constant 5.000000e-01 : f32
    %51 = vector.broadcast %cst_26 : f32 to vector<2x32xf32>
    %52 = arith.mulf %51, %50 : vector<2x32xf32>
    %53 = vector.extract_strided_slice %47 {offsets = [0, 32], sizes = [2, 32], strides = [1, 1]} : vector<2x128xf32> to vector<2x32xf32>
    %cst_27 = arith.constant 1.000000e+00 : f32
    %54 = vector.broadcast %cst_27 : f32 to vector<2x32xf32>
    %55 = arith.addf %54, %53 : vector<2x32xf32>
    %cst_28 = arith.constant 5.000000e-01 : f32
    %56 = vector.broadcast %cst_28 : f32 to vector<2x32xf32>
    %57 = arith.mulf %56, %55 : vector<2x32xf32>
    %58 = vector.extract_strided_slice %47 {offsets = [0, 64], sizes = [2, 32], strides = [1, 1]} : vector<2x128xf32> to vector<2x32xf32>
    %59 = vector.extract_strided_slice %47 {offsets = [0, 96], sizes = [2, 32], strides = [1, 1]} : vector<2x128xf32> to vector<2x32xf32>
    %cst_29 = arith.constant 1.000000e+00 : f32
    %60 = vector.broadcast %cst_29 : f32 to vector<2x32xf32>
    %61 = arith.addf %60, %59 : vector<2x32xf32>
    %cst_30 = arith.constant 5.000000e-01 : f32
    %62 = vector.broadcast %cst_30 : f32 to vector<2x32xf32>
    %63 = arith.mulf %62, %61 : vector<2x32xf32>
    %64 = arith.mulf %57, %35 : vector<2x32xf32>
    %65 = arith.mulf %52, %58 : vector<2x32xf32>
    %66 = arith.addf %64, %65 : vector<2x32xf32>
    %67 = math.tanh %66 : vector<2x32xf32>
    %68 = arith.mulf %63, %67 : vector<2x32xf32>
    %69 = arith.index_cast %41 : i32 to index
    %c0_31 = arith.constant 0 : index
    %70 = vector.load %arg5[%69, %c0_31] : memref<16x32xf32, #tpu.memory_space<vmem>>, vector<2x32xf32>
    tpu.vector_store %arg5[%69, %c0_31], %68 {strides = array<i32>} : memref<16x32xf32, #tpu.memory_space<vmem>>, vector<2x32xf32>,
    %c2_i32_32 = arith.constant 2 : i32
    %c2_i32_33 = arith.constant 2 : i32
    %71 = arith.muli %c2_i32_32, %c2_i32_33 : i32
    %72 = tpu.assume_multiple %71, 2 : i32
    %73 = arith.index_cast %72 : i32 to index
    %c0_34 = arith.constant 0 : index
    %74 = vector.load %arg8[%73, %c0_34] : memref<16x128xf32, #tpu.memory_space<vmem>>, vector<2x128xf32>
    %c0_35 = arith.constant 0 : index
    %c0_36 = arith.constant 0 : index
    %75 = vector.load %arg3[%c0_35, %c0_36] : memref<32x128xf32, #tpu.memory_space<vmem>>, vector<32x128xf32>
    %cst_37 = arith.constant dense<0.000000e+00> : vector<2x128xf32>
    %76 = tpu.matmul %68, %75, %cst_37 {dimension_numbers = #tpu.dot_dimension_numbers<[1], [0], [0], [1], [0, 0, 1, 1], [], []>} : vector<2x32xf32>, vector<32x128xf32>, vector<2x128xf32> -> vector<2x128xf32>
    %77 = arith.addf %74, %76 : vector<2x128xf32>
    %78 = math.tanh %77 : vector<2x128xf32>
    %79 = vector.extract_strided_slice %78 {offsets = [0, 0], sizes = [2, 32], strides = [1, 1]} : vector<2x128xf32> to vector<2x32xf32>
    %cst_38 = arith.constant 1.000000e+00 : f32
    %80 = vector.broadcast %cst_38 : f32 to vector<2x32xf32>
    %81 = arith.addf %80, %79 : vector<2x32xf32>
    %cst_39 = arith.constant 5.000000e-01 : f32
    %82 = vector.broadcast %cst_39 : f32 to vector<2x32xf32>
    %83 = arith.mulf %82, %81 : vector<2x32xf32>
    %84 = vector.extract_strided_slice %78 {offsets = [0, 32], sizes = [2, 32], strides = [1, 1]} : vector<2x128xf32> to vector<2x32xf32>
    %cst_40 = arith.constant 1.000000e+00 : f32
    %85 = vector.broadcast %cst_40 : f32 to vector<2x32xf32>
    %86 = arith.addf %85, %84 : vector<2x32xf32>
    %cst_41 = arith.constant 5.000000e-01 : f32
    %87 = vector.broadcast %cst_41 : f32 to vector<2x32xf32>
    %88 = arith.mulf %87, %86 : vector<2x32xf32>
    %89 = vector.extract_strided_slice %78 {offsets = [0, 64], sizes = [2, 32], strides = [1, 1]} : vector<2x128xf32> to vector<2x32xf32>
    %90 = vector.extract_strided_slice %78 {offsets = [0, 96], sizes = [2, 32], strides = [1, 1]} : vector<2x128xf32> to vector<2x32xf32>
    %cst_42 = arith.constant 1.000000e+00 : f32
    %91 = vector.broadcast %cst_42 : f32 to vector<2x32xf32>
    %92 = arith.addf %91, %90 : vector<2x32xf32>
    %cst_43 = arith.constant 5.000000e-01 : f32
    %93 = vector.broadcast %cst_43 : f32 to vector<2x32xf32>
    %94 = arith.mulf %93, %92 : vector<2x32xf32>
    %95 = arith.mulf %88, %66 : vector<2x32xf32>
    %96 = arith.mulf %83, %89 : vector<2x32xf32>
    %97 = arith.addf %95, %96 : vector<2x32xf32>
    %98 = math.tanh %97 : vector<2x32xf32>
    %99 = arith.mulf %94, %98 : vector<2x32xf32>
    %100 = arith.index_cast %72 : i32 to index
    %c0_44 = arith.constant 0 : index
    %101 = vector.load %arg5[%100, %c0_44] : memref<16x32xf32, #tpu.memory_space<vmem>>, vector<2x32xf32>
    tpu.vector_store %arg5[%100, %c0_44], %99 {strides = array<i32>} : memref<16x32xf32, #tpu.memory_space<vmem>>, vector<2x32xf32>,
    %c3_i32 = arith.constant 3 : i32
    %c2_i32_45 = arith.constant 2 : i32
    %102 = arith.muli %c3_i32, %c2_i32_45 : i32
    %103 = tpu.assume_multiple %102, 2 : i32
    %104 = arith.index_cast %103 : i32 to index
    %c0_46 = arith.constant 0 : index
    %105 = vector.load %arg8[%104, %c0_46] : memref<16x128xf32, #tpu.memory_space<vmem>>, vector<2x128xf32>
    %c0_47 = arith.constant 0 : index
    %c0_48 = arith.constant 0 : index
    %106 = vector.load %arg3[%c0_47, %c0_48] : memref<32x128xf32, #tpu.memory_space<vmem>>, vector<32x128xf32>
    %cst_49 = arith.constant dense<0.000000e+00> : vector<2x128xf32>
    %107 = tpu.matmul %99, %106, %cst_49 {dimension_numbers = #tpu.dot_dimension_numbers<[1], [0], [0], [1], [0, 0, 1, 1], [], []>} : vector<2x32xf32>, vector<32x128xf32>, vector<2x128xf32> -> vector<2x128xf32>
    %108 = arith.addf %105, %107 : vector<2x128xf32>
    %109 = math.tanh %108 : vector<2x128xf32>
    %110 = vector.extract_strided_slice %109 {offsets = [0, 0], sizes = [2, 32], strides = [1, 1]} : vector<2x128xf32> to vector<2x32xf32>
    %cst_50 = arith.constant 1.000000e+00 : f32
    %111 = vector.broadcast %cst_50 : f32 to vector<2x32xf32>
    %112 = arith.addf %111, %110 : vector<2x32xf32>
    %cst_51 = arith.constant 5.000000e-01 : f32
    %113 = vector.broadcast %cst_51 : f32 to vector<2x32xf32>
    %114 = arith.mulf %113, %112 : vector<2x32xf32>
    %115 = vector.extract_strided_slice %109 {offsets = [0, 32], sizes = [2, 32], strides = [1, 1]} : vector<2x128xf32> to vector<2x32xf32>
    %cst_52 = arith.constant 1.000000e+00 : f32
    %116 = vector.broadcast %cst_52 : f32 to vector<2x32xf32>
    %117 = arith.addf %116, %115 : vector<2x32xf32>
    %cst_53 = arith.constant 5.000000e-01 : f32
    %118 = vector.broadcast %cst_53 : f32 to vector<2x32xf32>
    %119 = arith.mulf %118, %117 : vector<2x32xf32>
    %120 = vector.extract_strided_slice %109 {offsets = [0, 64], sizes = [2, 32], strides = [1, 1]} : vector<2x128xf32> to vector<2x32xf32>
    %121 = vector.extract_strided_slice %109 {offsets = [0, 96], sizes = [2, 32], strides = [1, 1]} : vector<2x128xf32> to vector<2x32xf32>
    %cst_54 = arith.constant 1.000000e+00 : f32
    %122 = vector.broadcast %cst_54 : f32 to vector<2x32xf32>
    %123 = arith.addf %122, %121 : vector<2x32xf32>
    %cst_55 = arith.constant 5.000000e-01 : f32
    %124 = vector.broadcast %cst_55 : f32 to vector<2x32xf32>
    %125 = arith.mulf %124, %123 : vector<2x32xf32>
    %126 = arith.mulf %119, %97 : vector<2x32xf32>
    %127 = arith.mulf %114, %120 : vector<2x32xf32>
    %128 = arith.addf %126, %127 : vector<2x32xf32>
    %129 = math.tanh %128 : vector<2x32xf32>
    %130 = arith.mulf %125, %129 : vector<2x32xf32>
    %131 = arith.index_cast %103 : i32 to index
    %c0_56 = arith.constant 0 : index
    %132 = vector.load %arg5[%131, %c0_56] : memref<16x32xf32, #tpu.memory_space<vmem>>, vector<2x32xf32>
    tpu.vector_store %arg5[%131, %c0_56], %130 {strides = array<i32>} : memref<16x32xf32, #tpu.memory_space<vmem>>, vector<2x32xf32>,
    %c4_i32 = arith.constant 4 : i32
    %c2_i32_57 = arith.constant 2 : i32
    %133 = arith.muli %c4_i32, %c2_i32_57 : i32
    %134 = tpu.assume_multiple %133, 2 : i32
    %135 = arith.index_cast %134 : i32 to index
    %c0_58 = arith.constant 0 : index
    %136 = vector.load %arg8[%135, %c0_58] : memref<16x128xf32, #tpu.memory_space<vmem>>, vector<2x128xf32>
    %c0_59 = arith.constant 0 : index
    %c0_60 = arith.constant 0 : index
    %137 = vector.load %arg3[%c0_59, %c0_60] : memref<32x128xf32, #tpu.memory_space<vmem>>, vector<32x128xf32>
    %cst_61 = arith.constant dense<0.000000e+00> : vector<2x128xf32>
    %138 = tpu.matmul %130, %137, %cst_61 {dimension_numbers = #tpu.dot_dimension_numbers<[1], [0], [0], [1], [0, 0, 1, 1], [], []>} : vector<2x32xf32>, vector<32x128xf32>, vector<2x128xf32> -> vector<2x128xf32>
    %139 = arith.addf %136, %138 : vector<2x128xf32>
    %140 = math.tanh %139 : vector<2x128xf32>
    %141 = vector.extract_strided_slice %140 {offsets = [0, 0], sizes = [2, 32], strides = [1, 1]} : vector<2x128xf32> to vector<2x32xf32>
    %cst_62 = arith.constant 1.000000e+00 : f32
    %142 = vector.broadcast %cst_62 : f32 to vector<2x32xf32>
    %143 = arith.addf %142, %141 : vector<2x32xf32>
    %cst_63 = arith.constant 5.000000e-01 : f32
    %144 = vector.broadcast %cst_63 : f32 to vector<2x32xf32>
    %145 = arith.mulf %144, %143 : vector<2x32xf32>
    %146 = vector.extract_strided_slice %140 {offsets = [0, 32], sizes = [2, 32], strides = [1, 1]} : vector<2x128xf32> to vector<2x32xf32>
    %cst_64 = arith.constant 1.000000e+00 : f32
    %147 = vector.broadcast %cst_64 : f32 to vector<2x32xf32>
    %148 = arith.addf %147, %146 : vector<2x32xf32>
    %cst_65 = arith.constant 5.000000e-01 : f32
    %149 = vector.broadcast %cst_65 : f32 to vector<2x32xf32>
    %150 = arith.mulf %149, %148 : vector<2x32xf32>
    %151 = vector.extract_strided_slice %140 {offsets = [0, 64], sizes = [2, 32], strides = [1, 1]} : vector<2x128xf32> to vector<2x32xf32>
    %152 = vector.extract_strided_slice %140 {offsets = [0, 96], sizes = [2, 32], strides = [1, 1]} : vector<2x128xf32> to vector<2x32xf32>
    %cst_66 = arith.constant 1.000000e+00 : f32
    %153 = vector.broadcast %cst_66 : f32 to vector<2x32xf32>
    %154 = arith.addf %153, %152 : vector<2x32xf32>
    %cst_67 = arith.constant 5.000000e-01 : f32
    %155 = vector.broadcast %cst_67 : f32 to vector<2x32xf32>
    %156 = arith.mulf %155, %154 : vector<2x32xf32>
    %157 = arith.mulf %150, %128 : vector<2x32xf32>
    %158 = arith.mulf %145, %151 : vector<2x32xf32>
    %159 = arith.addf %157, %158 : vector<2x32xf32>
    %160 = math.tanh %159 : vector<2x32xf32>
    %161 = arith.mulf %156, %160 : vector<2x32xf32>
    %162 = arith.index_cast %134 : i32 to index
    %c0_68 = arith.constant 0 : index
    %163 = vector.load %arg5[%162, %c0_68] : memref<16x32xf32, #tpu.memory_space<vmem>>, vector<2x32xf32>
    tpu.vector_store %arg5[%162, %c0_68], %161 {strides = array<i32>} : memref<16x32xf32, #tpu.memory_space<vmem>>, vector<2x32xf32>,
    %c5_i32 = arith.constant 5 : i32
    %c2_i32_69 = arith.constant 2 : i32
    %164 = arith.muli %c5_i32, %c2_i32_69 : i32
    %165 = tpu.assume_multiple %164, 2 : i32
    %166 = arith.index_cast %165 : i32 to index
    %c0_70 = arith.constant 0 : index
    %167 = vector.load %arg8[%166, %c0_70] : memref<16x128xf32, #tpu.memory_space<vmem>>, vector<2x128xf32>
    %c0_71 = arith.constant 0 : index
    %c0_72 = arith.constant 0 : index
    %168 = vector.load %arg3[%c0_71, %c0_72] : memref<32x128xf32, #tpu.memory_space<vmem>>, vector<32x128xf32>
    %cst_73 = arith.constant dense<0.000000e+00> : vector<2x128xf32>
    %169 = tpu.matmul %161, %168, %cst_73 {dimension_numbers = #tpu.dot_dimension_numbers<[1], [0], [0], [1], [0, 0, 1, 1], [], []>} : vector<2x32xf32>, vector<32x128xf32>, vector<2x128xf32> -> vector<2x128xf32>
    %170 = arith.addf %167, %169 : vector<2x128xf32>
    %171 = math.tanh %170 : vector<2x128xf32>
    %172 = vector.extract_strided_slice %171 {offsets = [0, 0], sizes = [2, 32], strides = [1, 1]} : vector<2x128xf32> to vector<2x32xf32>
    %cst_74 = arith.constant 1.000000e+00 : f32
    %173 = vector.broadcast %cst_74 : f32 to vector<2x32xf32>
    %174 = arith.addf %173, %172 : vector<2x32xf32>
    %cst_75 = arith.constant 5.000000e-01 : f32
    %175 = vector.broadcast %cst_75 : f32 to vector<2x32xf32>
    %176 = arith.mulf %175, %174 : vector<2x32xf32>
    %177 = vector.extract_strided_slice %171 {offsets = [0, 32], sizes = [2, 32], strides = [1, 1]} : vector<2x128xf32> to vector<2x32xf32>
    %cst_76 = arith.constant 1.000000e+00 : f32
    %178 = vector.broadcast %cst_76 : f32 to vector<2x32xf32>
    %179 = arith.addf %178, %177 : vector<2x32xf32>
    %cst_77 = arith.constant 5.000000e-01 : f32
    %180 = vector.broadcast %cst_77 : f32 to vector<2x32xf32>
    %181 = arith.mulf %180, %179 : vector<2x32xf32>
    %182 = vector.extract_strided_slice %171 {offsets = [0, 64], sizes = [2, 32], strides = [1, 1]} : vector<2x128xf32> to vector<2x32xf32>
    %183 = vector.extract_strided_slice %171 {offsets = [0, 96], sizes = [2, 32], strides = [1, 1]} : vector<2x128xf32> to vector<2x32xf32>
    %cst_78 = arith.constant 1.000000e+00 : f32
    %184 = vector.broadcast %cst_78 : f32 to vector<2x32xf32>
    %185 = arith.addf %184, %183 : vector<2x32xf32>
    %cst_79 = arith.constant 5.000000e-01 : f32
    %186 = vector.broadcast %cst_79 : f32 to vector<2x32xf32>
    %187 = arith.mulf %186, %185 : vector<2x32xf32>
    %188 = arith.mulf %181, %159 : vector<2x32xf32>
    %189 = arith.mulf %176, %182 : vector<2x32xf32>
    %190 = arith.addf %188, %189 : vector<2x32xf32>
    %191 = math.tanh %190 : vector<2x32xf32>
    %192 = arith.mulf %187, %191 : vector<2x32xf32>
    %193 = arith.index_cast %165 : i32 to index
    %c0_80 = arith.constant 0 : index
    %194 = vector.load %arg5[%193, %c0_80] : memref<16x32xf32, #tpu.memory_space<vmem>>, vector<2x32xf32>
    tpu.vector_store %arg5[%193, %c0_80], %192 {strides = array<i32>} : memref<16x32xf32, #tpu.memory_space<vmem>>, vector<2x32xf32>,
    %c6_i32 = arith.constant 6 : i32
    %c2_i32_81 = arith.constant 2 : i32
    %195 = arith.muli %c6_i32, %c2_i32_81 : i32
    %196 = tpu.assume_multiple %195, 2 : i32
    %197 = arith.index_cast %196 : i32 to index
    %c0_82 = arith.constant 0 : index
    %198 = vector.load %arg8[%197, %c0_82] : memref<16x128xf32, #tpu.memory_space<vmem>>, vector<2x128xf32>
    %c0_83 = arith.constant 0 : index
    %c0_84 = arith.constant 0 : index
    %199 = vector.load %arg3[%c0_83, %c0_84] : memref<32x128xf32, #tpu.memory_space<vmem>>, vector<32x128xf32>
    %cst_85 = arith.constant dense<0.000000e+00> : vector<2x128xf32>
    %200 = tpu.matmul %192, %199, %cst_85 {dimension_numbers = #tpu.dot_dimension_numbers<[1], [0], [0], [1], [0, 0, 1, 1], [], []>} : vector<2x32xf32>, vector<32x128xf32>, vector<2x128xf32> -> vector<2x128xf32>
    %201 = arith.addf %198, %200 : vector<2x128xf32>
    %202 = math.tanh %201 : vector<2x128xf32>
    %203 = vector.extract_strided_slice %202 {offsets = [0, 0], sizes = [2, 32], strides = [1, 1]} : vector<2x128xf32> to vector<2x32xf32>
    %cst_86 = arith.constant 1.000000e+00 : f32
    %204 = vector.broadcast %cst_86 : f32 to vector<2x32xf32>
    %205 = arith.addf %204, %203 : vector<2x32xf32>
    %cst_87 = arith.constant 5.000000e-01 : f32
    %206 = vector.broadcast %cst_87 : f32 to vector<2x32xf32>
    %207 = arith.mulf %206, %205 : vector<2x32xf32>
    %208 = vector.extract_strided_slice %202 {offsets = [0, 32], sizes = [2, 32], strides = [1, 1]} : vector<2x128xf32> to vector<2x32xf32>
    %cst_88 = arith.constant 1.000000e+00 : f32
    %209 = vector.broadcast %cst_88 : f32 to vector<2x32xf32>
    %210 = arith.addf %209, %208 : vector<2x32xf32>
    %cst_89 = arith.constant 5.000000e-01 : f32
    %211 = vector.broadcast %cst_89 : f32 to vector<2x32xf32>
    %212 = arith.mulf %211, %210 : vector<2x32xf32>
    %213 = vector.extract_strided_slice %202 {offsets = [0, 64], sizes = [2, 32], strides = [1, 1]} : vector<2x128xf32> to vector<2x32xf32>
    %214 = vector.extract_strided_slice %202 {offsets = [0, 96], sizes = [2, 32], strides = [1, 1]} : vector<2x128xf32> to vector<2x32xf32>
    %cst_90 = arith.constant 1.000000e+00 : f32
    %215 = vector.broadcast %cst_90 : f32 to vector<2x32xf32>
    %216 = arith.addf %215, %214 : vector<2x32xf32>
    %cst_91 = arith.constant 5.000000e-01 : f32
    %217 = vector.broadcast %cst_91 : f32 to vector<2x32xf32>
    %218 = arith.mulf %217, %216 : vector<2x32xf32>
    %219 = arith.mulf %212, %190 : vector<2x32xf32>
    %220 = arith.mulf %207, %213 : vector<2x32xf32>
    %221 = arith.addf %219, %220 : vector<2x32xf32>
    %222 = math.tanh %221 : vector<2x32xf32>
    %223 = arith.mulf %218, %222 : vector<2x32xf32>
    %224 = arith.index_cast %196 : i32 to index
    %c0_92 = arith.constant 0 : index
    %225 = vector.load %arg5[%224, %c0_92] : memref<16x32xf32, #tpu.memory_space<vmem>>, vector<2x32xf32>
    tpu.vector_store %arg5[%224, %c0_92], %223 {strides = array<i32>} : memref<16x32xf32, #tpu.memory_space<vmem>>, vector<2x32xf32>,
    %c7_i32 = arith.constant 7 : i32
    %c2_i32_93 = arith.constant 2 : i32
    %226 = arith.muli %c7_i32, %c2_i32_93 : i32
    %227 = tpu.assume_multiple %226, 2 : i32
    %228 = arith.index_cast %227 : i32 to index
    %c0_94 = arith.constant 0 : index
    %229 = vector.load %arg8[%228, %c0_94] : memref<16x128xf32, #tpu.memory_space<vmem>>, vector<2x128xf32>
    %c0_95 = arith.constant 0 : index
    %c0_96 = arith.constant 0 : index
    %230 = vector.load %arg3[%c0_95, %c0_96] : memref<32x128xf32, #tpu.memory_space<vmem>>, vector<32x128xf32>
    %cst_97 = arith.constant dense<0.000000e+00> : vector<2x128xf32>
    %231 = tpu.matmul %223, %230, %cst_97 {dimension_numbers = #tpu.dot_dimension_numbers<[1], [0], [0], [1], [0, 0, 1, 1], [], []>} : vector<2x32xf32>, vector<32x128xf32>, vector<2x128xf32> -> vector<2x128xf32>
    %232 = arith.addf %229, %231 : vector<2x128xf32>
    %233 = math.tanh %232 : vector<2x128xf32>
    %234 = vector.extract_strided_slice %233 {offsets = [0, 0], sizes = [2, 32], strides = [1, 1]} : vector<2x128xf32> to vector<2x32xf32>
    %cst_98 = arith.constant 1.000000e+00 : f32
    %235 = vector.broadcast %cst_98 : f32 to vector<2x32xf32>
    %236 = arith.addf %235, %234 : vector<2x32xf32>
    %cst_99 = arith.constant 5.000000e-01 : f32
    %237 = vector.broadcast %cst_99 : f32 to vector<2x32xf32>
    %238 = arith.mulf %237, %236 : vector<2x32xf32>
    %239 = vector.extract_strided_slice %233 {offsets = [0, 32], sizes = [2, 32], strides = [1, 1]} : vector<2x128xf32> to vector<2x32xf32>
    %cst_100 = arith.constant 1.000000e+00 : f32
    %240 = vector.broadcast %cst_100 : f32 to vector<2x32xf32>
    %241 = arith.addf %240, %239 : vector<2x32xf32>
    %cst_101 = arith.constant 5.000000e-01 : f32
    %242 = vector.broadcast %cst_101 : f32 to vector<2x32xf32>
    %243 = arith.mulf %242, %241 : vector<2x32xf32>
    %244 = vector.extract_strided_slice %233 {offsets = [0, 64], sizes = [2, 32], strides = [1, 1]} : vector<2x128xf32> to vector<2x32xf32>
    %245 = vector.extract_strided_slice %233 {offsets = [0, 96], sizes = [2, 32], strides = [1, 1]} : vector<2x128xf32> to vector<2x32xf32>
    %cst_102 = arith.constant 1.000000e+00 : f32
    %246 = vector.broadcast %cst_102 : f32 to vector<2x32xf32>
    %247 = arith.addf %246, %245 : vector<2x32xf32>
    %cst_103 = arith.constant 5.000000e-01 : f32
    %248 = vector.broadcast %cst_103 : f32 to vector<2x32xf32>
    %249 = arith.mulf %248, %247 : vector<2x32xf32>
    %250 = arith.mulf %243, %221 : vector<2x32xf32>
    %251 = arith.mulf %238, %244 : vector<2x32xf32>
    %252 = arith.addf %250, %251 : vector<2x32xf32>
    %253 = math.tanh %252 : vector<2x32xf32>
    %254 = arith.mulf %249, %253 : vector<2x32xf32>
    %255 = arith.index_cast %227 : i32 to index
    %c0_104 = arith.constant 0 : index
    %256 = vector.load %arg5[%255, %c0_104] : memref<16x32xf32, #tpu.memory_space<vmem>>, vector<2x32xf32>
    tpu.vector_store %arg5[%255, %c0_104], %254 {strides = array<i32>} : memref<16x32xf32, #tpu.memory_space<vmem>>, vector<2x32xf32>,
    %c8_i32 = arith.constant 8 : i32
    %c0_105 = arith.constant 0 : index
    %c0_106 = arith.constant 0 : index
    %257 = vector.load %arg6[%c0_105, %c0_106] : memref<2x32xf32, #tpu.memory_space<vmem>>, vector<2x32xf32>
    tpu.vector_store %arg6[%c0_105, %c0_106], %254 {strides = array<i32>} : memref<2x32xf32, #tpu.memory_space<vmem>>, vector<2x32xf32>,
    %c0_107 = arith.constant 0 : index
    %c0_108 = arith.constant 0 : index
    %258 = vector.load %arg7[%c0_107, %c0_108] : memref<2x32xf32, #tpu.memory_space<vmem>>, vector<2x32xf32>
    tpu.vector_store %arg7[%c0_107, %c0_108], %252 {strides = array<i32>} : memref<2x32xf32, #tpu.memory_space<vmem>>, vector<2x32xf32>,
    return
  }
  func.func @transform_0(%arg0: i32) -> (i32, i32) {
    %c0_i32 = arith.constant 0 : i32
    %c0_i32_0 = arith.constant 0 : i32
    %c0_i32_1 = arith.constant 0 : i32
    return %c0_i32, %c0_i32_0 : i32, i32
  }
  func.func @transform_1(%arg0: i32) -> (i32, i32) {
    %c0_i32 = arith.constant 0 : i32
    %c0_i32_0 = arith.constant 0 : i32
    %c0_i32_1 = arith.constant 0 : i32
    return %c0_i32, %c0_i32_0 : i32, i32
  }
  func.func @transform_2(%arg0: i32) -> (i32, i32) {
    %c0_i32 = arith.constant 0 : i32
    %c0_i32_0 = arith.constant 0 : i32
    %c0_i32_1 = arith.constant 0 : i32
    return %c0_i32, %c0_i32_0 : i32, i32
  }
  func.func @transform_3(%arg0: i32) -> (i32, i32) {
    %c0_i32 = arith.constant 0 : i32
    %c0_i32_0 = arith.constant 0 : i32
    %c0_i32_1 = arith.constant 0 : i32
    return %c0_i32, %c0_i32_0 : i32, i32
  }
  func.func @transform_4(%arg0: i32) -> (i32, i32) {
    %c0_i32 = arith.constant 0 : i32
    %c0_i32_0 = arith.constant 0 : i32
    %c0_i32_1 = arith.constant 0 : i32
    return %c0_i32, %c0_i32_0 : i32, i32
  }
  func.func @transform_5(%arg0: i32) -> (i32, i32) {
    %c0_i32 = arith.constant 0 : i32
    %c0_i32_0 = arith.constant 0 : i32
    %c0_i32_1 = arith.constant 0 : i32
    return %c0_i32, %c0_i32_0 : i32, i32
  }
  func.func @transform_6(%arg0: i32) -> (i32, i32) {
    %c0_i32 = arith.constant 0 : i32
    %c0_i32_0 = arith.constant 0 : i32
    %c0_i32_1 = arith.constant 0 : i32
    return %c0_i32, %c0_i32_0 : i32, i32
  }
}

</mosaic_0001>

<bundles_post_ra>
// kernel: tpu_custom_call.1
= control target key start
LH: loop header
LB: loop body
LE: loop exit
PB: predicated region body
PF: predicated region fallthrough
CT: control target
= control target key end

     0   :  { %12 = vsyncpa [#allocation4], 0  ;;  %s949_s0 = inlined_call_operand.hbm [shape: f32[16,32], index: 0, kind: input, shape index: {}]   ;;  %s950_s1 = inlined_call_operand.hbm [shape: f32[32,128], index: 1, kind: input, shape index: {}]   ;;  %s951_s2 = inlined_call_operand.hbm [shape: f32[32,128], index: 2, kind: input, shape index: {}]   ;;  %s952_s3 = inlined_call_operand.vmem [shape: f32[1,128], index: 3, kind: input, shape index: {}]   ;;  %s953_s4 = inlined_call_operand.hbm [shape: f32[16,32], index: 4, kind: output, shape index: {0}]   ;;  %s954_s5 = inlined_call_operand.hbm [shape: f32[2,32], index: 5, kind: output, shape index: {1}]   ;;  %s955_s6 = inlined_call_operand.hbm [shape: f32[2,32], index: 6, kind: output, shape index: {2}]  }
   0x1   :  { %13 = vsyncpa [#allocation7], 0 }
   0x2   :  { %14 = vsyncpa [#allocation5], 0 }
   0x3   :  { %15 = vsyncpa [#allocation11], 0  ;;  %s33_s23 = sshll.u32 %s950_s1, 4  ;;  %s814_s24 = smov [#allocation6]   ;;  %s34_s23 = int_to_ptr.hbm [resolvable:$true] %s33_s23 }
   0x4   :  { %s35_s25 = sshll.u32 %s814_s24, 4  ;;  %s20_s28 = sshll.u32 %s949_s0, 4  ;;  %s36_s25 = int_to_ptr.vmem [resolvable:$true] %s35_s25  ;;  %s21_s28 = int_to_ptr.hbm [resolvable:$true] %s20_s28 }
   0x5   :  { %s815_s29 = smov 128   ;;  %s816_s30 = smov 8  }
   0x6   :  { %41 = dma.hbm_to_vmem [thread:$0]  %s34_s23, 512, %s36_s25, [#allocation7], %s815_s29, %s815_s29, %s816_s30  }
   0x7   :  { %s817_s7 = smov [#allocation3]   ;;  %s46_s1 = sshll.u32 %s951_s2, 4  ;;  %s47_s1 = int_to_ptr.hbm [resolvable:$true] %s46_s1 }
   0x8   :  { %s22_s8 = sshll.u32 %s817_s7, 4  ;;  %s818_s0 = smov [#allocation8]   ;;  %s23_s8 = int_to_ptr.vmem [resolvable:$true] %s22_s8 }
   0x9   :  { %28 = dma.hbm_to_vmem [thread:$0]  %s21_s28, 256, %s23_s8, [#allocation4], %s815_s29, %s815_s29, %s816_s30  }
   0xa   :  { %s48_s11 = sshll.u32 %s818_s0, 4  ;;  %s49_s11 = int_to_ptr.vmem [resolvable:$true] %s48_s11 }
   0xb   :  { %54 = dma.hbm_to_vmem [thread:$0]  %s47_s1, 512, %s49_s11, [#allocation7], %s815_s29, %s815_s29, %s816_s30  }
   0xc   :  { %806 = dma.done.wait [#allocation4], 256  }
   0xd   :  { %807 = vsyncadd [#allocation4], 4294967040 }
   0xe   :  { %808 = dma.done.wait [#allocation7], 1024  }
   0xf   :  { %809 = vsyncadd [#allocation7], 4294966272  ;;  %v74_v0 = vld [vmem:[#allocation6 + $0x18] sm:$0xff]  ;;  %v73_v1 = vld [vmem:[#allocation6 + $0x10] sm:$0xff]  ;;  %vm79_vm0 = vcmask 261120   ;;  %v819_v9 = vmov 0.0  }
  0x10   :  { %98 = vmatpush.msra.mxu0 %v74_v0  ;;  %v115_v2 = vld [vmem:[#allocation8 + $0x18] sm:$0xff]  ;;  %v72_v3 = vld [vmem:[#allocation6 + $0x8] sm:$0xff]  ;;  %v114_v4 = vld [vmem:[#allocation8 + $0x10] sm:$0xff]  ;;  %s820_s13 = smov 64   ;;  %s821_s14 = smov 32   ;;  %vm164_vm1 = vcmask 254976  }
  0x11   :  { %131 = vmatpush.msra.mxu1 %v115_v2  ;;  %186 = vmatpush.msra.mxu2 %v115_v2  ;;  %v113_v5 = vld [vmem:[#allocation8 + $0x8] sm:$0xff]  ;;  %v71_v6 = vld [vmem:[#allocation6] sm:$0xff]  ;;  %v69_v7 = vld [vmem:[#allocation3] sm:$0xff]  ;;  %s823_s15 = smov [#allocation9]   ;;  %s563_s19 = sshll.u32 %s953_s4, 4  ;;  %s564_s19 = int_to_ptr.hbm [resolvable:$true] %s563_s19 }
  0x12   :  { %99 = vmatpush.msra.mxu0 %v73_v1  ;;  %241 = vmatpush.msra.mxu3 %v115_v2  ;;  %v112_v8 = vld [vmem:[#allocation8] sm:$0xff]  ;;  %s561_s16 = sshll.u32 %s823_s15, 4  ;;  %s824_s20 = smov [#allocation10]   ;;  %s562_s16 = int_to_ptr.vmem [resolvable:$true] %s561_s16 }
  0x13   :  { %132 = vmatpush.msra.mxu1 %v114_v4  ;;  %187 = vmatpush.msra.mxu2 %v114_v4  ;;  %v883_v10 = vld [vmem:[%s952_s3] ss:$0 sm:$0xff]  ;;  %s822_s3 = smov 96   ;;  %s575_s21 = sshll.u32 %s824_s20, 4  ;;  %s576_s21 = int_to_ptr.vmem [resolvable:$true] %s575_s21 }
  0x14   :  { %100 = vmatpush.msra.mxu0 %v72_v3  ;;  %242 = vmatpush.msra.mxu3 %v114_v4  ;;  %s577_s24 = sshll.u32 %s954_s5, 4  ;;  %s825_s25 = smov [#allocation12]   ;;  %s578_s24 = int_to_ptr.hbm [resolvable:$true] %s577_s24 }
  0x15   :  { %133 = vmatpush.msra.mxu1 %v113_v5  ;;  %188 = vmatpush.msra.mxu2 %v113_v5  ;;  %s586_s26 = sshll.u32 %s825_s25, 4  ;;  %s588_s7 = sshll.u32 %s955_s6, 4  ;;  %s587_s26 = int_to_ptr.vmem [resolvable:$true] %s586_s26  ;;  %s589_s7 = int_to_ptr.hbm [resolvable:$true] %s588_s7 }
  0x16   :  { %101 = vmatpush.msra.mxu0 %v71_v6  ;;  %243 = vmatpush.msra.mxu3 %v113_v5  ;;  %v70_v6 = vld [vmem:[#allocation3 + $0x8] sm:$0xff] }
  0x17   :  { %608 = vmatmul.msk.f32.vlgmr.msra.gmra.mxu0 %vm79_vm0, %v69_v7  ;;  %134 = vmatpush.msra.mxu1 %v112_v8 }
  0x18   :  { %135 = vmatmul.f32.vlgmr.msra.gmra.mxu1 %v819_v9  ;;  %189 = vmatpush.msra.mxu2 %v112_v8 }
  0x19   :  { %244 = vmatpush.msra.mxu3 %v112_v8  ;;  %296 = vmatpush.msrb.mxu1 %v115_v2 }
  0x1a   :  { %351 = vmatpush.msrb.mxu2 %v115_v2  ;;  %461 = vmatpush.msrb.mxu0 %v115_v2 }
  0x1b   :  { %406 = vmatpush.msrb.mxu3 %v115_v2  ;;  %297 = vmatpush.msrb.mxu1 %v114_v4 }
  0x1c   :  { %352 = vmatpush.msrb.mxu2 %v114_v4  ;;  %462 = vmatpush.msrb.mxu0 %v114_v4 }
  0x1d   :  { %407 = vmatpush.msrb.mxu3 %v114_v4  ;;  %298 = vmatpush.msrb.mxu1 %v113_v5 }
  0x1e   :  { %353 = vmatpush.msrb.mxu2 %v113_v5  ;;  %463 = vmatpush.msrb.mxu0 %v113_v5 }
  0x1f   :  { %408 = vmatpush.msrb.mxu3 %v113_v5  ;;  %299 = vmatpush.msrb.mxu1 %v112_v8 }
  0x20   :  { %354 = vmatpush.msrb.mxu2 %v112_v8  ;;  %464 = vmatpush.msrb.mxu0 %v112_v8 }
  0x21   :  { %409 = vmatpush.msrb.mxu3 %v112_v8  ;;  %516 = vmatpush.msra.mxu1 %v115_v2 }
  0x22   :  { %609 = vmatmul.msk.f32.gmra.mxu0 %vm79_vm0, %v70_v6 }
  0x23   :  { %517 = vmatpush.msra.mxu1 %v114_v4 }
  0x25   :  { %518 = vmatpush.msra.mxu1 %v113_v5 }
  0x27   :  { %519 = vmatpush.msra.mxu1 %v112_v8 }
  0x94   :  { %v103_v11 = vpop.f32.mrf.mxu0 }
  0x95   :  { %v104_v12 = vadd.f32 %v883_v10, %v103_v11  ;;  %v136_v13 = vpop.f32.mrf.mxu1 }
  0x97   :  { %109 = vst [vmem:[#allocation2] sm:$0xff] %v104_v12 }
  0x9e   :  { %v111_v14 = vld [vmem:[#allocation2] sm:$0x3]  ;;  %v167_v28 = vld [vmem:[#allocation2 + $0x2] sm:$0x3]  ;;  %v222_v43 = vld [vmem:[#allocation2 + $0x4] sm:$0x3] }
  0x9f   :  { %v139_v15 = vadd.f32 %v136_v13, %v111_v14  ;;  %v277_v58 = vld [vmem:[#allocation2 + $0x6] sm:$0x3]  ;;  %v106_v9 = vpop.f32.mrf.mxu0 }
  0xa0   :  { %v107_v11 = vadd.f32 %v883_v10, %v106_v9 }
  0xa1   :  { %630 = vtanh.f32 %v139_v15 }
  0xa2   :  { %110 = vst [vmem:[#allocation2 + $0x8] sm:$0xff] %v107_v11 }
  0xa7   :  { %v631_v16 = vpop.eup %630 }
  0xa8   :  { %145 = vrot.lane.b32.xlu0 %v631_v16, %s820_s13  ;;  %v141_v17 = vadd.f32 1.0, %v631_v16 }
  0xa9   :  { %v332_v13 = vld [vmem:[#allocation2 + $0x8] sm:$0x3] }
  0xaa   :  { %v142_v18 = vmul.f32 0.5, %v141_v17 }
  0xac   :  { %v143_v21 = vmul.f32 0.0, %v142_v18 }
 0x11a   :  { %v146_v19 = vpop.permute.xlu0 %145 }
 0x11b   :  { %v148_v20 = vmul.f32 %v146_v19, %v142_v18 }
 0x11d   :  { %150 = vrot.lane.b32.xlu0 %v148_v20, %s821_s14 }
 0x18f   :  { %v151_v22 = vpop.permute.xlu0 %150 }
 0x190   :  { %v153_v23 = vadd.f32 %v151_v22, %v143_v21 }
 0x192   :  { %632 = vtanh.f32 %v153_v23 }
 0x198   :  { %v633_v24 = vpop.eup %632 }
 0x199   :  { %156 = vrot.lane.b32.xlu1 %v633_v24, %s820_s13 }
 0x20b   :  { %v157_v25 = vpop.permute.xlu1 %156 }
 0x20c   :  { %v159_v26 = vmul.f32 %v157_v25, %v142_v18 }
 0x20e   :  { %161 = vrot.lane.b32.xlu1 %v159_v26, %s821_s14 }
 0x280   :  { %v162_v27 = vpop.permute.xlu1 %161 }
 0x281   :  { %165 = vst.msk [vmem:[#allocation9] sm:$0x3] %vm164_vm1, %v162_v27  ;;  %610 = vmatmul.msk.f32.vlgmr.msra.gmra.mxu2 %vm79_vm0, %v162_v27  ;;  %v387_v27 = vld [vmem:[#allocation2 + $0xa] sm:$0x3] }
 0x304   :  { %v191_v29 = vpop.f32.mrf.mxu2 }
 0x305   :  { %v194_v30 = vadd.f32 %v191_v29, %v167_v28 }
 0x307   :  { %634 = vtanh.f32 %v194_v30 }
 0x30d   :  { %v635_v31 = vpop.eup %634 }
 0x30e   :  { %200 = vrot.lane.b32.xlu2 %v635_v31, %s820_s13  ;;  %v196_v32 = vadd.f32 1.0, %v635_v31 }
 0x310   :  { %v197_v33 = vmul.f32 0.5, %v196_v32 }
 0x312   :  { %v198_v36 = vmul.f32 %v197_v33, %v153_v23 }
 0x368   :  { %v201_v34 = vpop.permute.xlu2 %200 }
 0x369   :  { %v203_v35 = vmul.f32 %v201_v34, %v197_v33 }
 0x36b   :  { %205 = vrot.lane.b32.xlu2 %v203_v35, %s821_s14 }
 0x3c5   :  { %v206_v37 = vpop.permute.xlu2 %205 }
 0x3c6   :  { %v208_v38 = vadd.f32 %v206_v37, %v198_v36 }
 0x3c8   :  { %636 = vtanh.f32 %v208_v38 }
 0x3ce   :  { %v637_v39 = vpop.eup %636 }
 0x3cf   :  { %211 = vrot.lane.b32.xlu0 %v637_v39, %s820_s13 }
 0x441   :  { %v212_v40 = vpop.permute.xlu0 %211 }
 0x442   :  { %v214_v41 = vmul.f32 %v212_v40, %v197_v33 }
 0x444   :  { %216 = vrot.lane.b32.xlu1 %v214_v41, %s821_s14 }
 0x4b6   :  { %v217_v42 = vpop.permute.xlu1 %216 }
 0x4b7   :  { %220 = vst.msk [vmem:[#allocation9 + $0x2] sm:$0x3] %vm164_vm1, %v217_v42  ;;  %611 = vmatmul.msk.f32.vlgmr.msra.gmra.mxu3 %vm79_vm0, %v217_v42  ;;  %v442_v42 = vld [vmem:[#allocation2 + $0xc] sm:$0x3] }
 0x53a   :  { %v246_v44 = vpop.f32.mrf.mxu3 }
 0x53b   :  { %v249_v45 = vadd.f32 %v246_v44, %v222_v43 }
 0x53d   :  { %638 = vtanh.f32 %v249_v45 }
 0x543   :  { %v639_v46 = vpop.eup %638 }
 0x544   :  { %255 = vrot.lane.b32.xlu2 %v639_v46, %s820_s13  ;;  %v251_v47 = vadd.f32 1.0, %v639_v46 }
 0x546   :  { %v252_v48 = vmul.f32 0.5, %v251_v47 }
 0x548   :  { %v253_v51 = vmul.f32 %v252_v48, %v208_v38 }
 0x59e   :  { %v256_v49 = vpop.permute.xlu2 %255 }
 0x59f   :  { %v258_v50 = vmul.f32 %v256_v49, %v252_v48 }
 0x5a1   :  { %260 = vrot.lane.b32.xlu0 %v258_v50, %s821_s14 }
 0x613   :  { %v261_v52 = vpop.permute.xlu0 %260 }
 0x614   :  { %v263_v53 = vadd.f32 %v261_v52, %v253_v51 }
 0x616   :  { %640 = vtanh.f32 %v263_v53 }
 0x61c   :  { %v641_v54 = vpop.eup %640 }
 0x61d   :  { %266 = vrot.lane.b32.xlu1 %v641_v54, %s820_s13 }
 0x68f   :  { %v267_v55 = vpop.permute.xlu1 %266 }
 0x690   :  { %v269_v56 = vmul.f32 %v267_v55, %v252_v48 }
 0x692   :  { %271 = vrot.lane.b32.xlu2 %v269_v56, %s821_s14 }
 0x6ec   :  { %v272_v57 = vpop.permute.xlu2 %271 }
 0x6ed   :  { %275 = vst.msk [vmem:[#allocation9 + $0x4] sm:$0x3] %vm164_vm1, %v272_v57  ;;  %612 = vmatmul.msk.f32.vlgmr.msrb.gmra.mxu1 %vm79_vm0, %v272_v57  ;;  %v497_v57 = vld [vmem:[#allocation2 + $0xe] sm:$0x3] }
 0x76a   :  { %v301_v59 = vpop.f32.mrf.mxu1 }
 0x76b   :  { %v304_v60 = vadd.f32 %v301_v59, %v277_v58 }
 0x76d   :  { %642 = vtanh.f32 %v304_v60 }
 0x773   :  { %v643_v61 = vpop.eup %642 }
 0x774   :  { %310 = vrot.lane.b32.xlu0 %v643_v61, %s820_s13  ;;  %v306_v62 = vadd.f32 1.0, %v643_v61 }
 0x776   :  { %v307_v63 = vmul.f32 0.5, %v306_v62 }
 0x778   :  { %v308_v2 = vmul.f32 %v307_v63, %v263_v53 }
 0x7e6   :  { %v311_v0 = vpop.permute.xlu0 %310 }
 0x7e7   :  { %v313_v1 = vmul.f32 %v311_v0, %v307_v63 }
 0x7e9   :  { %315 = vrot.lane.b32.xlu1 %v313_v1, %s821_s14 }
 0x85b   :  { %v316_v3 = vpop.permute.xlu1 %315 }
 0x85c   :  { %v318_v4 = vadd.f32 %v316_v3, %v308_v2 }
 0x85e   :  { %644 = vtanh.f32 %v318_v4 }
 0x864   :  { %v645_v5 = vpop.eup %644 }
 0x865   :  { %321 = vrot.lane.b32.xlu2 %v645_v5, %s820_s13 }
 0x8bf   :  { %v322_v7 = vpop.permute.xlu2 %321 }
 0x8c0   :  { %v324_v8 = vmul.f32 %v322_v7, %v307_v63 }
 0x8c2   :  { %326 = vrot.lane.b32.xlu0 %v324_v8, %s821_s14 }
 0x934   :  { %v327_v12 = vpop.permute.xlu0 %326 }
 0x935   :  { %330 = vst.msk [vmem:[#allocation9 + $0x6] sm:$0x3] %vm164_vm1, %v327_v12  ;;  %613 = vmatmul.msk.f32.vlgmr.msrb.gmra.mxu2 %vm79_vm0, %v327_v12 }
 0x9b8   :  { %v356_v14 = vpop.f32.mrf.mxu2 }
 0x9b9   :  { %v359_v15 = vadd.f32 %v356_v14, %v332_v13 }
 0x9bb   :  { %646 = vtanh.f32 %v359_v15 }
 0x9c1   :  { %v647_v16 = vpop.eup %646 }
 0x9c2   :  { %365 = vrot.lane.b32.xlu1 %v647_v16, %s820_s13  ;;  %v361_v17 = vadd.f32 1.0, %v647_v16 }
 0x9c4   :  { %v362_v18 = vmul.f32 0.5, %v361_v17 }
 0x9c6   :  { %v363_v10 = vmul.f32 %v362_v18, %v318_v4 }
 0xa34   :  { %v366_v19 = vpop.permute.xlu1 %365 }
 0xa35   :  { %v368_v20 = vmul.f32 %v366_v19, %v362_v18 }
 0xa37   :  { %370 = vrot.lane.b32.xlu2 %v368_v20, %s821_s14 }
 0xa91   :  { %v371_v21 = vpop.permute.xlu2 %370 }
 0xa92   :  { %v373_v22 = vadd.f32 %v371_v21, %v363_v10 }
 0xa94   :  { %648 = vtanh.f32 %v373_v22 }
 0xa9a   :  { %v649_v23 = vpop.eup %648 }
 0xa9b   :  { %376 = vrot.lane.b32.xlu0 %v649_v23, %s820_s13 }
 0xb0d   :  { %v377_v24 = vpop.permute.xlu0 %376 }
 0xb0e   :  { %v379_v25 = vmul.f32 %v377_v24, %v362_v18 }
 0xb10   :  { %381 = vrot.lane.b32.xlu1 %v379_v25, %s821_s14 }
 0xb82   :  { %v382_v26 = vpop.permute.xlu1 %381 }
 0xb83   :  { %385 = vst.msk [vmem:[#allocation9 + $0x8] sm:$0x3] %vm164_vm1, %v382_v26  ;;  %614 = vmatmul.msk.f32.vlgmr.msrb.gmra.mxu3 %vm79_vm0, %v382_v26 }
 0xc06   :  { %v411_v28 = vpop.f32.mrf.mxu3 }
 0xc07   :  { %v414_v29 = vadd.f32 %v411_v28, %v387_v27 }
 0xc09   :  { %650 = vtanh.f32 %v414_v29 }
 0xc0f   :  { %v651_v30 = vpop.eup %650 }
 0xc10   :  { %420 = vrot.lane.b32.xlu2 %v651_v30, %s820_s13  ;;  %v416_v31 = vadd.f32 1.0, %v651_v30 }
 0xc12   :  { %v417_v32 = vmul.f32 0.5, %v416_v31 }
 0xc14   :  { %v418_v35 = vmul.f32 %v417_v32, %v373_v22 }
 0xc6a   :  { %v421_v33 = vpop.permute.xlu2 %420 }
 0xc6b   :  { %v423_v34 = vmul.f32 %v421_v33, %v417_v32 }
 0xc6d   :  { %425 = vrot.lane.b32.xlu0 %v423_v34, %s821_s14 }
 0xcdf   :  { %v426_v36 = vpop.permute.xlu0 %425 }
 0xce0   :  { %v428_v37 = vadd.f32 %v426_v36, %v418_v35 }
 0xce2   :  { %652 = vtanh.f32 %v428_v37 }
 0xce8   :  { %v653_v38 = vpop.eup %652 }
 0xce9   :  { %431 = vrot.lane.b32.xlu1 %v653_v38, %s820_s13 }
 0xd5b   :  { %v432_v39 = vpop.permute.xlu1 %431 }
 0xd5c   :  { %v434_v40 = vmul.f32 %v432_v39, %v417_v32 }
 0xd5e   :  { %436 = vrot.lane.b32.xlu2 %v434_v40, %s821_s14 }
 0xdb8   :  { %v437_v41 = vpop.permute.xlu2 %436 }
 0xdb9   :  { %440 = vst.msk [vmem:[#allocation9 + $0xa] sm:$0x3] %vm164_vm1, %v437_v41  ;;  %615 = vmatmul.msk.f32.vlgmr.msrb.gmra.mxu0 %vm79_vm0, %v437_v41 }
 0xe36   :  { %v466_v43 = vpop.f32.mrf.mxu0 }
 0xe37   :  { %v469_v44 = vadd.f32 %v466_v43, %v442_v42 }
 0xe39   :  { %654 = vtanh.f32 %v469_v44 }
 0xe3f   :  { %v655_v45 = vpop.eup %654 }
 0xe40   :  { %475 = vrot.lane.b32.xlu0 %v655_v45, %s820_s13  ;;  %v471_v46 = vadd.f32 1.0, %v655_v45 }
 0xe42   :  { %v472_v47 = vmul.f32 0.5, %v471_v46 }
 0xe44   :  { %v473_v50 = vmul.f32 %v472_v47, %v428_v37 }
 0xeb2   :  { %v476_v48 = vpop.permute.xlu0 %475 }
 0xeb3   :  { %v478_v49 = vmul.f32 %v476_v48, %v472_v47 }
 0xeb5   :  { %480 = vrot.lane.b32.xlu1 %v478_v49, %s821_s14 }
 0xf27   :  { %v481_v51 = vpop.permute.xlu1 %480 }
 0xf28   :  { %v483_v52 = vadd.f32 %v481_v51, %v473_v50 }
 0xf2a   :  { %656 = vtanh.f32 %v483_v52 }
 0xf30   :  { %v657_v53 = vpop.eup %656 }
 0xf31   :  { %486 = vrot.lane.b32.xlu2 %v657_v53, %s820_s13 }
 0xf8b   :  { %v487_v54 = vpop.permute.xlu2 %486 }
 0xf8c   :  { %v489_v55 = vmul.f32 %v487_v54, %v472_v47 }
 0xf8e   :  { %491 = vrot.lane.b32.xlu0 %v489_v55, %s821_s14 }
0x1000   :  { %v492_v56 = vpop.permute.xlu0 %491 }
0x1001   :  { %495 = vst.msk [vmem:[#allocation9 + $0xc] sm:$0x3] %vm164_vm1, %v492_v56  ;;  %616 = vmatmul.msk.f32.vlgmr.msra.gmra.mxu1 %vm79_vm0, %v492_v56 }
0x107e   :  { %v521_v58 = vpop.f32.mrf.mxu1 }
0x107f   :  { %v524_v59 = vadd.f32 %v521_v58, %v497_v57 }
0x1081   :  { %658 = vtanh.f32 %v524_v59 }
0x1087   :  { %v659_v60 = vpop.eup %658 }
0x1088   :  { %530 = vrot.lane.b32.xlu1 %v659_v60, %s820_s13  ;;  %v526_v61 = vadd.f32 1.0, %v659_v60 }
0x108a   :  { %v527_v62 = vmul.f32 0.5, %v526_v61 }
0x108c   :  { %v528_v1 = vmul.f32 %v527_v62, %v483_v52 }
0x10fa   :  { %v531_v63 = vpop.permute.xlu1 %530 }
0x10fb   :  { %v533_v0 = vmul.f32 %v531_v63, %v527_v62 }
0x10fd   :  { %535 = vrot.lane.b32.xlu2 %v533_v0, %s821_s14 }
0x1157   :  { %v536_v2 = vpop.permute.xlu2 %535 }
0x1158   :  { %v538_v3 = vadd.f32 %v536_v2, %v528_v1 }
0x115a   :  { %660 = vtanh.f32 %v538_v3  ;;  %553 = vrot.lane.b32.xlu2 %v538_v3, %s822_s3 }
0x1160   :  { %v661_v4 = vpop.eup %660 }
0x1161   :  { %541 = vrot.lane.b32.xlu0 %v661_v4, %s820_s13 }
0x11b4   :  { %v554_v5 = vpop.permute.xlu2 %553 }
0x11b5   :  { %556 = vst.msk [vmem:[#allocation12] sm:$0x3] %vm164_vm1, %v554_v5 }
0x11d3   :  { %v542_v6 = vpop.permute.xlu0 %541 }
0x11d4   :  { %v544_v7 = vmul.f32 %v542_v6, %v527_v62 }
0x11d6   :  { %546 = vrot.lane.b32.xlu1 %v544_v7, %s821_s14 }
0x1248   :  { %v547_v8 = vpop.permute.xlu1 %546 }
0x1249   :  { %550 = vst.msk [vmem:[#allocation9 + $0xe] sm:$0x3] %vm164_vm1, %v547_v8 }
0x124a   :  { %551 = vst.msk [vmem:[#allocation10] sm:$0x3] %vm164_vm1, %v547_v8  ;;  %569 = dma.vmem_to_hbm [thread:$0]  %s562_s16, 256, %s564_s19, [#allocation5], %s815_s29, %s815_s29, %s816_s30  }
0x124b   :  { %580 = dma.vmem_to_hbm [thread:$0]  %s576_s21, 32, %s578_s24, [#allocation11]  }
0x124c   :  { %591 = dma.vmem_to_hbm [thread:$0]  %s587_s26, 32, %s589_s7, [#allocation11]  }
0x124d   :  { %810 = dma.done.wait [#allocation5], 256  }
0x124e   :  { %811 = vsyncadd [#allocation5], 4294967040 }
0x124f   :  { %812 = dma.done.wait [#allocation11], 64  }
0x1250   :  { %813 = vsyncadd [#allocation11], 4294967232 }
0x1251   :  { %604 = vsyncpa [#allocation4], 1 }
0x1252   :  { %605 = vsyncpa [#allocation7], 1 }
0x1253   :  { %606 = vsyncpa [#allocation5], 1 }
0x1254   :  { %607 = vsyncpa [#allocation11], 1 }

</bundles_post_ra>
